<compile_context>
chip_gen: v5e
topology: v5e:2x2
jax: 0.10.0
libtpu: 0.0.40
codegen_flags: <defaults>
</compile_context>

<pallas_src>
import numpy as np
import jax
import jax.numpy as jnp
from jax.experimental import pallas as pl
from jax.experimental.pallas import tpu as pltpu

BN_EPS = 1e-5


# ----------------------------------------------------------------------------
# Pallas kernels
# ----------------------------------------------------------------------------
def _conv3x3_body(xs_ref, xu_ref, w_ref, xp_ref):
    """Zero-halo fill (concat in VMEM only) + 9-tap MXU conv.

    xs_ref: (1, H, W, Cs)        skip feature map
    xu_ref: (1, H, W, Cu)        2x-upsampled deeper feature map
    w_ref : (3, 3, Cs+Cu, Cout)  merged HWIO weight slab
    xp_ref: (H+2, W+2, Cs+Cu)    VMEM halo scratch (compute dtype)
    Returns the f32 (H*W, Cout) pre-BN accumulator as a traced value
    (register / MXU-result-buffer accumulation, no VMEM RMW per tap).
    """
    _, H, W, Cs = xs_ref.shape
    Cu = xu_ref.shape[-1]
    Cin = Cs + Cu
    Cout = w_ref.shape[-1]
    dt = xp_ref.dtype

    # Zero only the 1-pixel border; the interior is fully overwritten below.
    xp_ref[0, :, :] = jnp.zeros((W + 2, Cin), dt)
    xp_ref[H + 1, :, :] = jnp.zeros((W + 2, Cin), dt)
    xp_ref[:, 0, :] = jnp.zeros((H + 2, Cin), dt)
    xp_ref[:, W + 1, :] = jnp.zeros((H + 2, Cin), dt)

    # Channel concat([skip, up]) happens only inside VMEM.
    xp_ref[pl.ds(1, H), pl.ds(1, W), pl.ds(0, Cs)] = xs_ref[0].astype(dt)
    xp_ref[pl.ds(1, H), pl.ds(1, W), pl.ds(Cs, Cu)] = xu_ref[0].astype(dt)

    # 9 taps, K = Cs+Cu, f32 accumulation in a traced value.
    acc = jnp.zeros((H * W, Cout), jnp.float32)
    for dy in range(3):
        for dx in range(3):
            a = xp_ref[pl.ds(dy, H), pl.ds(dx, W), :].reshape(H * W, Cin)
            acc = acc + jnp.dot(a, w_ref[dy, dx],
                                preferred_element_type=jnp.float32)
    return acc


def _conv3x3_bn_relu_kernel(xs_ref, xu_ref, w_ref, s_ref, b_ref, o_ref,
                            xp_ref):
    """conv3x3([skip ; up]) -> folded BN -> ReLU, one image per grid step."""
    acc = _conv3x3_body(xs_ref, xu_ref, w_ref, xp_ref)
    y = jnp.maximum(acc * s_ref[...] + b_ref[...], 0.0)
    o_ref[0] = y.astype(o_ref.dtype)                      # (H*W, Cout) slab


def _conv3x3_bn_relu_logit_kernel(xs_ref, xu_ref, w_ref, s_ref, b_ref,
                                  wl_ref, bl_ref, o_ref, xp_ref):
    """Last stage: conv3x3 -> BN -> ReLU -> fused Cout->1 logit (1x1 conv).

    The post-ReLU feature map never leaves VMEM; the logit is computed on the
    VPU (multiply + lane reduce) and stored lane-dense as (1, H*W).
    """
    acc = _conv3x3_body(xs_ref, xu_ref, w_ref, xp_ref)
    y = jnp.maximum(acc * s_ref[...] + b_ref[...], 0.0)   # (H*W, Cout) f32
    z = jnp.sum(y * wl_ref[...], axis=-1) + bl_ref[0]     # (H*W,)
    o_ref[0] = z.reshape(1, -1).astype(o_ref.dtype)


def _logit1x1_kernel(x_ref, w_ref, b_ref, o_ref):
    """Standalone 1x1 conv (Cout=1) for the degenerate no-conv-stage case."""
    x = x_ref[0].astype(jnp.float32)             # (H, W, Cin)
    w = w_ref[...].astype(jnp.float32)           # (1, Cin) -> broadcasts
    y = jnp.sum(x * w, axis=-1) + b_ref[0]       # (H, W)
    o_ref[0] = y.astype(o_ref.dtype)


# ----------------------------------------------------------------------------
# Wrappers
# ----------------------------------------------------------------------------
def _vmem_limit_bytes(H, W, Cin, Cout, in_isz, out_isz):
    est = (2 * H * W * Cin * in_isz          # double-buffered inputs
           + 2 * 9 * Cin * Cout * in_isz     # weights
           + (H + 2) * (W + 2) * Cin * in_isz  # halo scratch
           + H * W * Cout * 4                # f32 accumulator (vregs / spill)
           + 2 * H * W * Cout * out_isz)     # double-buffered output
    return int(min(max(2 * est, 32 * 1024 * 1024), 48 * 1024 * 1024))


def conv3x3_bn_relu(skip_nhwc, up_nhwc, w_hwio, scale, bias, *, out_dtype):
    """Conv2d(3x3, stride 1, pad 1, bias=False) over concat([skip, up]) +
    folded BN + ReLU, without materializing the concat (or a pad) in HBM."""
    N, H, W, Cs = skip_nhwc.shape
    Cu = up_nhwc.shape[-1]
    Cin, Cout = w_hwio.shape[2], w_hwio.shape[3]
    assert Cin == Cs + Cu
    cdt = w_hwio.dtype
    cparams = pltpu.CompilerParams(
        dimension_semantics=("parallel",),
        vmem_limit_bytes=_vmem_limit_bytes(
            H, W, Cin, Cout, np.dtype(cdt).itemsize,
            np.dtype(out_dtype).itemsize))
    out = pl.pallas_call(
        _conv3x3_bn_relu_kernel,
        out_shape=jax.ShapeDtypeStruct((N, H * W, Cout), out_dtype),
        grid=(N,),
        in_specs=[
            pl.BlockSpec((1, H, W, Cs), lambda n: (n, 0, 0, 0)),
            pl.BlockSpec((1, H, W, Cu), lambda n: (n, 0, 0, 0)),
            pl.BlockSpec((3, 3, Cin, Cout), lambda n: (0, 0, 0, 0)),
            pl.BlockSpec((1, Cout), lambda n: (0, 0)),
            pl.BlockSpec((1, Cout), lambda n: (0, 0)),
        ],
        out_specs=pl.BlockSpec((1, H * W, Cout), lambda n: (n, 0, 0)),
        scratch_shapes=[pltpu.VMEM((H + 2, W + 2, Cin), cdt)],
        compiler_params=cparams,
    )(skip_nhwc, up_nhwc, w_hwio, scale, bias)
    # Row-major (N, H*W, Cout) -> (N, H, W, Cout) is a free reshape.
    return out.reshape(N, H, W, Cout)


def conv3x3_bn_relu_logit(skip_nhwc, up_nhwc, w_hwio, scale, bias,
                          logit_w, logit_b):
    """Last decoder stage with the 1x1 logit fused into the epilogue.
    Returns the (N, H, W) float32 logit map; the post-ReLU feature map is
    never written to HBM."""
    N, H, W, Cs = skip_nhwc.shape
    Cu = up_nhwc.shape[-1]
    Cin, Cout = w_hwio.shape[2], w_hwio.shape[3]
    assert Cin == Cs + Cu
    cdt = w_hwio.dtype
    cparams = pltpu.CompilerParams(
        dimension_semantics=("parallel",),
        vmem_limit_bytes=_vmem_limit_bytes(
            H, W, Cin, Cout, np.dtype(cdt).itemsize, 4))
    out = pl.pallas_call(
        _conv3x3_bn_relu_logit_kernel,
        out_shape=jax.ShapeDtypeStruct((N, 1, H * W), jnp.float32),
        grid=(N,),
        in_specs=[
            pl.BlockSpec((1, H, W, Cs), lambda n: (n, 0, 0, 0)),
            pl.BlockSpec((1, H, W, Cu), lambda n: (n, 0, 0, 0)),
            pl.BlockSpec((3, 3, Cin, Cout), lambda n: (0, 0, 0, 0)),
            pl.BlockSpec((1, Cout), lambda n: (0, 0)),
            pl.BlockSpec((1, Cout), lambda n: (0, 0)),
            pl.BlockSpec((1, Cout), lambda n: (0, 0)),
            pl.BlockSpec(memory_space=pltpu.MemorySpace.SMEM),
        ],
        out_specs=pl.BlockSpec((1, 1, H * W), lambda n: (n, 0, 0)),
        scratch_shapes=[pltpu.VMEM((H + 2, W + 2, Cin), cdt)],
        compiler_params=cparams,
    )(skip_nhwc, up_nhwc, w_hwio, scale, bias,
      logit_w.reshape(1, Cout).astype(jnp.float32),
      logit_b.reshape(1).astype(jnp.float32))
    return out.reshape(N, H, W)


def logit_conv1x1(x_nhwc, w_vec, b_scalar):
    """Conv2d(Cin -> 1, 1x1) + bias; output (N, H, W) float32.  Only used when
    the decoder has no conv stages (len(encoder_dims) == 1)."""
    N, H, W, Cin = x_nhwc.shape
    return pl.pallas_call(
        _logit1x1_kernel,
        out_shape=jax.ShapeDtypeStruct((N, H, W), jnp.float32),
        grid=(N,),
        in_specs=[
            pl.BlockSpec((1, H, W, Cin), lambda n: (n, 0, 0, 0)),
            pl.BlockSpec((1, Cin), lambda n: (0, 0)),
            pl.BlockSpec(memory_space=pltpu.MemorySpace.SMEM),
        ],
        out_specs=pl.BlockSpec((1, H, W), lambda n: (n, 0, 0)),
        compiler_params=pltpu.CompilerParams(
            dimension_semantics=("parallel",)),
    )(x_nhwc,
      w_vec.reshape(1, Cin).astype(jnp.float32),
      b_scalar.reshape(1).astype(jnp.float32))


# ----------------------------------------------------------------------------
# Bilinear interpolation (PyTorch align_corners=False semantics) — JAX glue.
# TODO(synk): gather-based bilinear interpolation kept in plain JAX; the exact
#             2x path should move into the conv kernel's halo fill (see top).
# ----------------------------------------------------------------------------
def _interp_params(in_size, out_size):
    scale = in_size / out_size
    dst = np.arange(out_size, dtype=np.float64)
    src = np.maximum((dst + 0.5) * scale - 0.5, 0.0)
    i0 = np.minimum(np.floor(src).astype(np.int64), in_size - 1)
    i1 = np.minimum(i0 + 1, in_size - 1)
    w1 = (src - i0).astype(np.float32)
    w0 = (1.0 - w1).astype(np.float32)
    return (jnp.asarray(i0, jnp.int32), jnp.asarray(i1, jnp.int32),
            jnp.asarray(w0), jnp.asarray(w1))


def bilinear_resize(x, h_axis, w_axis, out_h, out_w):
    """F.interpolate(..., mode='bilinear', align_corners=False), any layout."""
    H, W = x.shape[h_axis], x.shape[w_axis]
    i0h, i1h, w0h, w1h = _interp_params(H, out_h)
    i0w, i1w, w0w, w1w = _interp_params(W, out_w)

    def bc(v, axis):
        shape = [1] * x.ndim
        shape[axis] = v.shape[0]
        return v.reshape(shape)

    xh = (jnp.take(x, i0h, axis=h_axis) * bc(w0h, h_axis)
          + jnp.take(x, i1h, axis=h_axis) * bc(w1h, h_axis))
    xw = (jnp.take(xh, i0w, axis=w_axis) * bc(w0w, w_axis)
          + jnp.take(xh, i1w, axis=w_axis) * bc(w1w, w_axis))
    return xw.astype(x.dtype)


# ----------------------------------------------------------------------------
# Parameter preparation (done ONCE, outside the hot forward path)
# ----------------------------------------------------------------------------
def prepare_decoder_params(params, compute_dtype=jnp.float32):
    """OIHW -> merged HWIO weight slabs, BN folded into (scale, bias)."""
    prep = {"convs": [], "logit": {}, "compute_dtype": compute_dtype}
    for p in params["convs"]:
        cout = p["w"].shape[0]
        scale = p["gamma"] * jax.lax.rsqrt(p["var"] + BN_EPS)
        bias = p["beta"] - p["mean"] * scale
        prep["convs"].append({
            # merged (3, 3, Cs+Cu, Cout): channels [0:Cs] = skip, [Cs:] = up,
            # matching torch.cat([skip, up], dim=1) ordering.
            "w": jnp.transpose(p["w"], (2, 3, 1, 0)).astype(compute_dtype),
            "scale": scale.reshape(1, cout).astype(jnp.float32),
            "bias": bias.reshape(1, cout).astype(jnp.float32),
        })
    prep["logit"] = {
        "w": params["logit"]["w"][0, :, 0, 0].astype(jnp.float32),  # (Cin0,)
        "b": params["logit"]["b"].astype(jnp.float32),              # (1,)
    }
    return prep


# ----------------------------------------------------------------------------
# Decoder forward (Pallas path) and pure-JAX reference
# ----------------------------------------------------------------------------
def decoder_forward(feature_maps, prepared, upscale):
    """feature_maps: list of NCHW arrays. Returns NCHW (N, 1, H*up, W*up)."""
    cdt = prepared["compute_dtype"]
    # One layout change at entry; everything else stays NHWC.
    fms = [jnp.transpose(f, (0, 2, 3, 1)).astype(cdt) for f in feature_maps]
    n = len(fms)
    if n == 1:
        logit = logit_conv1x1(fms[0], prepared["logit"]["w"],
                              prepared["logit"]["b"])
    else:
        logit = None
        for i in range(n - 1, 0, -1):
            _, H, W, _ = fms[i].shape
            f_up = bilinear_resize(fms[i], 1, 2, 2 * H, 2 * W)
            p = prepared["convs"][i - 1]
            if i == 1:
                # fms[0] after the last conv feeds only the 1x1 logit: fuse it
                # into the epilogue; the feature map never hits HBM.
                logit = conv3x3_bn_relu_logit(
                    fms[0], f_up, p["w"], p["scale"], p["bias"],
                    prepared["logit"]["w"], prepared["logit"]["b"])
            else:
                fms[i - 1] = conv3x3_bn_relu(
                    fms[i - 1], f_up, p["w"], p["scale"], p["bias"],
                    out_dtype=cdt)
    _, H0, W0 = logit.shape
    mask = bilinear_resize(logit, 1, 2, H0 * upscale, W0 * upscale)
    return mask[:, None, :, :]                      # NCHW (N, 1, ., .)


def ref_decoder_forward(feature_maps, params, upscale):
    def bilinear_nchw(x, out_h, out_w):
        return bilinear_resize(x, 2, 3, out_h, out_w)

    fms = list(feature_maps)
    for i in range(len(fms) - 1, 0, -1):
        _, _, H, W = fms[i].shape
        f_up = bilinear_nchw(fms[i], 2 * H, 2 * W)
        f = jnp.concatenate([fms[i - 1], f_up], axis=1)
        p = params["convs"][i - 1]
        y = jax.lax.conv_general_dilated(
            f, p["w"], (1, 1), ((1, 1), (1, 1)),
            dimension_numbers=("NCHW", "OIHW", "NCHW"))
        scale = p["gamma"] * jax.lax.rsqrt(p["var"] + BN_EPS)
        bias = p["beta"] - p["mean"] * scale
        y = y * scale[None, :, None, None] + bias[None, :, None, None]
        fms[i - 1] = jnp.maximum(y, 0.0)
    p = params["logit"]
    x = jax.lax.conv_general_dilated(
        fms[0], p["w"], (1, 1), ((0, 0), (0, 0)),
        dimension_numbers=("NCHW", "OIHW", "NCHW"))
    x = x + p["b"][None, :, None, None]
    _, _, H0, W0 = x.shape
    return bilinear_nchw(x, H0 * upscale, W0 * upscale)


def init_params(key, encoder_dims):
    params = {"convs": [], "logit": {}}
    for i in range(1, len(encoder_dims)):
        cin = encoder_dims[i] + encoder_dims[i - 1]
        cout = encoder_dims[i - 1]
        key, k1, k2, k3, k4, k5 = jax.random.split(key, 6)
        params["convs"].append({
            "w": 0.1 * jax.random.normal(k1, (cout, cin, 3, 3), jnp.float32),
            "gamma": 1.0 + 0.1 * jax.random.normal(k2, (cout,), jnp.float32),
            "beta": 0.1 * jax.random.normal(k3, (cout,), jnp.float32),
            "mean": 0.1 * jax.random.normal(k4, (cout,), jnp.float32),
            "var": 1.0 + 0.1 * jax.random.uniform(k5, (cout,), jnp.float32),
        })
    key, k1, k2 = jax.random.split(key, 3)
    params["logit"] = {
        "w": 0.1 * jax.random.normal(k1, (1, encoder_dims[0], 1, 1),
                                     jnp.float32),
        "b": 0.1 * jax.random.normal(k2, (1,), jnp.float32),
    }
    return params


if __name__ == "__main__":
    encoder_dims = [8, 16, 32]
    upscale = 4
    N, base = 2, 16

    key = jax.random.PRNGKey(0)
    key, kp = jax.random.split(key)
    params = init_params(kp, encoder_dims)

    feature_maps = []
    for i, c in enumerate(encoder_dims):
        key, kf = jax.random.split(key)
        s = base // (2 ** i)
        feature_maps.append(jax.random.normal(kf, (N, c, s, s), jnp.float32))

    ref = jax.block_until_ready(
        ref_decoder_forward(feature_maps, params, upscale))

    # f32 path. Tolerance covers TPU MXU default-precision (bf16-pass)
    # differences between lax.conv (reference) and the 9-tap matmul
    # formulation in the kernel; exact equality is not expected on hardware.
    prep_f32 = prepare_decoder_params(params, jnp.float32)
    mask = jax.block_until_ready(
        decoder_forward(feature_maps, prep_f32, upscale))
    assert mask.shape == (N, 1, base * upscale, base * upscale), mask.shape
    assert np.allclose(np.asarray(mask), np.asarray(ref),
                       atol=3e-2, rtol=3e-2)

    # bf16 compute path (v6e/v7x bandwidth + MXU-rate optimization): bf16
    # activations/weights/halo scratch, f32 accumulation + f32 BN/ReLU/logit.
    prep_bf16 = prepare_decoder_params(params, jnp.bfloat16)
    mask_bf16 = jax.block_until_ready(
        decoder_forward(feature_maps, prep_bf16, upscale))
    assert mask_bf16.shape == mask.shape
    assert np.allclose(np.asarray(mask_bf16, dtype=np.float32),
                       np.asarray(ref), atol=2e-1, rtol=2e-1)

    print("KERNEL_OK")
</pallas_src>

<mosaic_0001>
module attributes {stable_mosaic.version = 11 : i64} {
  func.func @_conv3x3_bn_relu_kernel(%arg0: i32, %arg1: memref<1x8x8x16xf32, #tpu.memory_space<vmem>>, %arg2: memref<1x8x8x32xf32, #tpu.memory_space<vmem>>, %arg3: memref<3x3x48x16xf32, #tpu.memory_space<vmem>>, %arg4: memref<1x16xf32, #tpu.memory_space<vmem>>, %arg5: memref<1x16xf32, #tpu.memory_space<vmem>>, %arg6: memref<1x64x16xf32, #tpu.memory_space<vmem>>, %arg7: memref<10x10x48xf32, #tpu.memory_space<vmem>>) attributes {dimension_semantics = [#tpu.dimension_semantics<parallel>], iteration_bounds = array<i64: 2>, scalar_prefetch = 0 : i64, scratch_operands = 1 : i64, tpu.core_type = #tpu.core_type<tc>, window_params = [{transform_indices = @transform_0, window_bounds = array<i64: 1, 8, 8, 16>}, {transform_indices = @transform_1, window_bounds = array<i64: 1, 8, 8, 32>}, {pipeline_mode = #tpu.pipeline_mode<synchronous>, transform_indices = @transform_2, window_bounds = array<i64: 3, 3, 48, 16>}, {pipeline_mode = #tpu.pipeline_mode<synchronous>, transform_indices = @transform_3, window_bounds = array<i64: 1, 16>}, {pipeline_mode = #tpu.pipeline_mode<synchronous>, transform_indices = @transform_4, window_bounds = array<i64: 1, 16>}, {transform_indices = @transform_5, window_bounds = array<i64: 1, 64, 16>}]} {
    %cst = arith.constant 0.000000e+00 : f32
    %0 = vector.broadcast %cst : f32 to vector<10x48xf32>
    %c0 = arith.constant 0 : index
    %c0_0 = arith.constant 0 : index
    %c0_1 = arith.constant 0 : index
    %1 = vector.load %arg7[%c0, %c0_0, %c0_1] : memref<10x10x48xf32, #tpu.memory_space<vmem>>, vector<1x10x48xf32>
    %2 = vector.shape_cast %1 : vector<1x10x48xf32> to vector<10x48xf32>
    %3 = vector.shape_cast %0 : vector<10x48xf32> to vector<1x10x48xf32>
    tpu.vector_store %arg7[%c0, %c0_0, %c0_1], %3 {strides = array<i32>} : memref<10x10x48xf32, #tpu.memory_space<vmem>>, vector<1x10x48xf32>,
    %cst_2 = arith.constant 0.000000e+00 : f32
    %4 = vector.broadcast %cst_2 : f32 to vector<10x48xf32>
    %c9 = arith.constant 9 : index
    %c0_3 = arith.constant 0 : index
    %c0_4 = arith.constant 0 : index
    %5 = vector.load %arg7[%c9, %c0_3, %c0_4] : memref<10x10x48xf32, #tpu.memory_space<vmem>>, vector<1x10x48xf32>
    %6 = vector.shape_cast %5 : vector<1x10x48xf32> to vector<10x48xf32>
    %7 = vector.shape_cast %4 : vector<10x48xf32> to vector<1x10x48xf32>
    tpu.vector_store %arg7[%c9, %c0_3, %c0_4], %7 {strides = array<i32>} : memref<10x10x48xf32, #tpu.memory_space<vmem>>, vector<1x10x48xf32>,
    %cst_5 = arith.constant 0.000000e+00 : f32
    %8 = vector.broadcast %cst_5 : f32 to vector<10x48xf32>
    %c0_6 = arith.constant 0 : index
    %c0_7 = arith.constant 0 : index
    %c0_8 = arith.constant 0 : index
    %9 = vector.load %arg7[%c0_6, %c0_7, %c0_8] : memref<10x10x48xf32, #tpu.memory_space<vmem>>, vector<10x1x48xf32>
    %10 = vector.shape_cast %9 : vector<10x1x48xf32> to vector<10x48xf32>
    %11 = vector.shape_cast %8 : vector<10x48xf32> to vector<10x1x48xf32>
    tpu.vector_store %arg7[%c0_6, %c0_7, %c0_8], %11 {strides = array<i32>} : memref<10x10x48xf32, #tpu.memory_space<vmem>>, vector<10x1x48xf32>,
    %cst_9 = arith.constant 0.000000e+00 : f32
    %12 = vector.broadcast %cst_9 : f32 to vector<10x48xf32>
    %c0_10 = arith.constant 0 : index
    %c9_11 = arith.constant 9 : index
    %c0_12 = arith.constant 0 : index
    %13 = vector.load %arg7[%c0_10, %c9_11, %c0_12] : memref<10x10x48xf32, #tpu.memory_space<vmem>>, vector<10x1x48xf32>
    %14 = vector.shape_cast %13 : vector<10x1x48xf32> to vector<10x48xf32>
    %15 = vector.shape_cast %12 : vector<10x48xf32> to vector<10x1x48xf32>
    tpu.vector_store %arg7[%c0_10, %c9_11, %c0_12], %15 {strides = array<i32>} : memref<10x10x48xf32, #tpu.memory_space<vmem>>, vector<10x1x48xf32>,
    %c0_13 = arith.constant 0 : index
    %c0_14 = arith.constant 0 : index
    %c0_15 = arith.constant 0 : index
    %c0_16 = arith.constant 0 : index
    %16 = vector.load %arg1[%c0_13, %c0_14, %c0_15, %c0_16] : memref<1x8x8x16xf32, #tpu.memory_space<vmem>>, vector<1x8x8x16xf32>
    %17 = vector.shape_cast %16 : vector<1x8x8x16xf32> to vector<8x8x16xf32>
    %c1 = arith.constant 1 : index
    %c1_17 = arith.constant 1 : index
    %c0_18 = arith.constant 0 : index
    %18 = vector.load %arg7[%c1, %c1_17, %c0_18] : memref<10x10x48xf32, #tpu.memory_space<vmem>>, vector<8x8x16xf32>
    tpu.vector_store %arg7[%c1, %c1_17, %c0_18], %17 {strides = array<i32>} : memref<10x10x48xf32, #tpu.memory_space<vmem>>, vector<8x8x16xf32>,
    %c0_19 = arith.constant 0 : index
    %c0_20 = arith.constant 0 : index
    %c0_21 = arith.constant 0 : index
    %c0_22 = arith.constant 0 : index
    %19 = vector.load %arg2[%c0_19, %c0_20, %c0_21, %c0_22] : memref<1x8x8x32xf32, #tpu.memory_space<vmem>>, vector<1x8x8x32xf32>
    %20 = vector.shape_cast %19 : vector<1x8x8x32xf32> to vector<8x8x32xf32>
    %c1_23 = arith.constant 1 : index
    %c1_24 = arith.constant 1 : index
    %c16 = arith.constant 16 : index
    %21 = vector.load %arg7[%c1_23, %c1_24, %c16] : memref<10x10x48xf32, #tpu.memory_space<vmem>>, vector<8x8x32xf32>
    tpu.vector_store %arg7[%c1_23, %c1_24, %c16], %20 {strides = array<i32>} : memref<10x10x48xf32, #tpu.memory_space<vmem>>, vector<8x8x32xf32>,
    %cst_25 = arith.constant 0.000000e+00 : f32
    %22 = vector.broadcast %cst_25 : f32 to vector<64x16xf32>
    %c0_26 = arith.constant 0 : index
    %c0_27 = arith.constant 0 : index
    %c0_28 = arith.constant 0 : index
    %23 = vector.load %arg7[%c0_26, %c0_27, %c0_28] : memref<10x10x48xf32, #tpu.memory_space<vmem>>, vector<8x8x48xf32>
    %24 = vector.shape_cast %23 : vector<8x8x48xf32> to vector<64x48xf32>
    %c0_29 = arith.constant 0 : index
    %c0_30 = arith.constant 0 : index
    %c0_31 = arith.constant 0 : index
    %c0_32 = arith.constant 0 : index
    %25 = vector.load %arg3[%c0_29, %c0_30, %c0_31, %c0_32] : memref<3x3x48x16xf32, #tpu.memory_space<vmem>>, vector<1x1x48x16xf32>
    %26 = vector.shape_cast %25 : vector<1x1x48x16xf32> to vector<48x16xf32>
    %cst_33 = arith.constant dense<0.000000e+00> : vector<64x16xf32>
    %27 = tpu.matmul %24, %26, %cst_33 {dimension_numbers = #tpu.dot_dimension_numbers<[1], [0], [0], [1], [0, 0, 1, 1], [], []>} : vector<64x48xf32>, vector<48x16xf32>, vector<64x16xf32> -> vector<64x16xf32>
    %28 = arith.addf %22, %27 : vector<64x16xf32>
    %c0_34 = arith.constant 0 : index
    %c1_35 = arith.constant 1 : index
    %c0_36 = arith.constant 0 : index
    %29 = vector.load %arg7[%c0_34, %c1_35, %c0_36] : memref<10x10x48xf32, #tpu.memory_space<vmem>>, vector<8x8x48xf32>
    %30 = vector.shape_cast %29 : vector<8x8x48xf32> to vector<64x48xf32>
    %c0_37 = arith.constant 0 : index
    %c1_38 = arith.constant 1 : index
    %c0_39 = arith.constant 0 : index
    %c0_40 = arith.constant 0 : index
    %31 = vector.load %arg3[%c0_37, %c1_38, %c0_39, %c0_40] : memref<3x3x48x16xf32, #tpu.memory_space<vmem>>, vector<1x1x48x16xf32>
    %32 = vector.shape_cast %31 : vector<1x1x48x16xf32> to vector<48x16xf32>
    %cst_41 = arith.constant dense<0.000000e+00> : vector<64x16xf32>
    %33 = tpu.matmul %30, %32, %cst_41 {dimension_numbers = #tpu.dot_dimension_numbers<[1], [0], [0], [1], [0, 0, 1, 1], [], []>} : vector<64x48xf32>, vector<48x16xf32>, vector<64x16xf32> -> vector<64x16xf32>
    %34 = arith.addf %28, %33 : vector<64x16xf32>
    %c0_42 = arith.constant 0 : index
    %c2 = arith.constant 2 : index
    %c0_43 = arith.constant 0 : index
    %35 = vector.load %arg7[%c0_42, %c2, %c0_43] : memref<10x10x48xf32, #tpu.memory_space<vmem>>, vector<8x8x48xf32>
    %36 = vector.shape_cast %35 : vector<8x8x48xf32> to vector<64x48xf32>
    %c0_44 = arith.constant 0 : index
    %c2_45 = arith.constant 2 : index
    %c0_46 = arith.constant 0 : index
    %c0_47 = arith.constant 0 : index
    %37 = vector.load %arg3[%c0_44, %c2_45, %c0_46, %c0_47] : memref<3x3x48x16xf32, #tpu.memory_space<vmem>>, vector<1x1x48x16xf32>
    %38 = vector.shape_cast %37 : vector<1x1x48x16xf32> to vector<48x16xf32>
    %cst_48 = arith.constant dense<0.000000e+00> : vector<64x16xf32>
    %39 = tpu.matmul %36, %38, %cst_48 {dimension_numbers = #tpu.dot_dimension_numbers<[1], [0], [0], [1], [0, 0, 1, 1], [], []>} : vector<64x48xf32>, vector<48x16xf32>, vector<64x16xf32> -> vector<64x16xf32>
    %40 = arith.addf %34, %39 : vector<64x16xf32>
    %c1_49 = arith.constant 1 : index
    %c0_50 = arith.constant 0 : index
    %c0_51 = arith.constant 0 : index
    %41 = vector.load %arg7[%c1_49, %c0_50, %c0_51] : memref<10x10x48xf32, #tpu.memory_space<vmem>>, vector<8x8x48xf32>
    %42 = vector.shape_cast %41 : vector<8x8x48xf32> to vector<64x48xf32>
    %c1_52 = arith.constant 1 : index
    %c0_53 = arith.constant 0 : index
    %c0_54 = arith.constant 0 : index
    %c0_55 = arith.constant 0 : index
    %43 = vector.load %arg3[%c1_52, %c0_53, %c0_54, %c0_55] : memref<3x3x48x16xf32, #tpu.memory_space<vmem>>, vector<1x1x48x16xf32>
    %44 = vector.shape_cast %43 : vector<1x1x48x16xf32> to vector<48x16xf32>
    %cst_56 = arith.constant dense<0.000000e+00> : vector<64x16xf32>
    %45 = tpu.matmul %42, %44, %cst_56 {dimension_numbers = #tpu.dot_dimension_numbers<[1], [0], [0], [1], [0, 0, 1, 1], [], []>} : vector<64x48xf32>, vector<48x16xf32>, vector<64x16xf32> -> vector<64x16xf32>
    %46 = arith.addf %40, %45 : vector<64x16xf32>
    %c1_57 = arith.constant 1 : index
    %c1_58 = arith.constant 1 : index
    %c0_59 = arith.constant 0 : index
    %47 = vector.load %arg7[%c1_57, %c1_58, %c0_59] : memref<10x10x48xf32, #tpu.memory_space<vmem>>, vector<8x8x48xf32>
    %48 = vector.shape_cast %47 : vector<8x8x48xf32> to vector<64x48xf32>
    %c1_60 = arith.constant 1 : index
    %c1_61 = arith.constant 1 : index
    %c0_62 = arith.constant 0 : index
    %c0_63 = arith.constant 0 : index
    %49 = vector.load %arg3[%c1_60, %c1_61, %c0_62, %c0_63] : memref<3x3x48x16xf32, #tpu.memory_space<vmem>>, vector<1x1x48x16xf32>
    %50 = vector.shape_cast %49 : vector<1x1x48x16xf32> to vector<48x16xf32>
    %cst_64 = arith.constant dense<0.000000e+00> : vector<64x16xf32>
    %51 = tpu.matmul %48, %50, %cst_64 {dimension_numbers = #tpu.dot_dimension_numbers<[1], [0], [0], [1], [0, 0, 1, 1], [], []>} : vector<64x48xf32>, vector<48x16xf32>, vector<64x16xf32> -> vector<64x16xf32>
    %52 = arith.addf %46, %51 : vector<64x16xf32>
    %c1_65 = arith.constant 1 : index
    %c2_66 = arith.constant 2 : index
    %c0_67 = arith.constant 0 : index
    %53 = vector.load %arg7[%c1_65, %c2_66, %c0_67] : memref<10x10x48xf32, #tpu.memory_space<vmem>>, vector<8x8x48xf32>
    %54 = vector.shape_cast %53 : vector<8x8x48xf32> to vector<64x48xf32>
    %c1_68 = arith.constant 1 : index
    %c2_69 = arith.constant 2 : index
    %c0_70 = arith.constant 0 : index
    %c0_71 = arith.constant 0 : index
    %55 = vector.load %arg3[%c1_68, %c2_69, %c0_70, %c0_71] : memref<3x3x48x16xf32, #tpu.memory_space<vmem>>, vector<1x1x48x16xf32>
    %56 = vector.shape_cast %55 : vector<1x1x48x16xf32> to vector<48x16xf32>
    %cst_72 = arith.constant dense<0.000000e+00> : vector<64x16xf32>
    %57 = tpu.matmul %54, %56, %cst_72 {dimension_numbers = #tpu.dot_dimension_numbers<[1], [0], [0], [1], [0, 0, 1, 1], [], []>} : vector<64x48xf32>, vector<48x16xf32>, vector<64x16xf32> -> vector<64x16xf32>
    %58 = arith.addf %52, %57 : vector<64x16xf32>
    %c2_73 = arith.constant 2 : index
    %c0_74 = arith.constant 0 : index
    %c0_75 = arith.constant 0 : index
    %59 = vector.load %arg7[%c2_73, %c0_74, %c0_75] : memref<10x10x48xf32, #tpu.memory_space<vmem>>, vector<8x8x48xf32>
    %60 = vector.shape_cast %59 : vector<8x8x48xf32> to vector<64x48xf32>
    %c2_76 = arith.constant 2 : index
    %c0_77 = arith.constant 0 : index
    %c0_78 = arith.constant 0 : index
    %c0_79 = arith.constant 0 : index
    %61 = vector.load %arg3[%c2_76, %c0_77, %c0_78, %c0_79] : memref<3x3x48x16xf32, #tpu.memory_space<vmem>>, vector<1x1x48x16xf32>
    %62 = vector.shape_cast %61 : vector<1x1x48x16xf32> to vector<48x16xf32>
    %cst_80 = arith.constant dense<0.000000e+00> : vector<64x16xf32>
    %63 = tpu.matmul %60, %62, %cst_80 {dimension_numbers = #tpu.dot_dimension_numbers<[1], [0], [0], [1], [0, 0, 1, 1], [], []>} : vector<64x48xf32>, vector<48x16xf32>, vector<64x16xf32> -> vector<64x16xf32>
    %64 = arith.addf %58, %63 : vector<64x16xf32>
    %c2_81 = arith.constant 2 : index
    %c1_82 = arith.constant 1 : index
    %c0_83 = arith.constant 0 : index
    %65 = vector.load %arg7[%c2_81, %c1_82, %c0_83] : memref<10x10x48xf32, #tpu.memory_space<vmem>>, vector<8x8x48xf32>
    %66 = vector.shape_cast %65 : vector<8x8x48xf32> to vector<64x48xf32>
    %c2_84 = arith.constant 2 : index
    %c1_85 = arith.constant 1 : index
    %c0_86 = arith.constant 0 : index
    %c0_87 = arith.constant 0 : index
    %67 = vector.load %arg3[%c2_84, %c1_85, %c0_86, %c0_87] : memref<3x3x48x16xf32, #tpu.memory_space<vmem>>, vector<1x1x48x16xf32>
    %68 = vector.shape_cast %67 : vector<1x1x48x16xf32> to vector<48x16xf32>
    %cst_88 = arith.constant dense<0.000000e+00> : vector<64x16xf32>
    %69 = tpu.matmul %66, %68, %cst_88 {dimension_numbers = #tpu.dot_dimension_numbers<[1], [0], [0], [1], [0, 0, 1, 1], [], []>} : vector<64x48xf32>, vector<48x16xf32>, vector<64x16xf32> -> vector<64x16xf32>
    %70 = arith.addf %64, %69 : vector<64x16xf32>
    %c2_89 = arith.constant 2 : index
    %c2_90 = arith.constant 2 : index
    %c0_91 = arith.constant 0 : index
    %71 = vector.load %arg7[%c2_89, %c2_90, %c0_91] : memref<10x10x48xf32, #tpu.memory_space<vmem>>, vector<8x8x48xf32>
    %72 = vector.shape_cast %71 : vector<8x8x48xf32> to vector<64x48xf32>
    %c2_92 = arith.constant 2 : index
    %c2_93 = arith.constant 2 : index
    %c0_94 = arith.constant 0 : index
    %c0_95 = arith.constant 0 : index
    %73 = vector.load %arg3[%c2_92, %c2_93, %c0_94, %c0_95] : memref<3x3x48x16xf32, #tpu.memory_space<vmem>>, vector<1x1x48x16xf32>
    %74 = vector.shape_cast %73 : vector<1x1x48x16xf32> to vector<48x16xf32>
    %cst_96 = arith.constant dense<0.000000e+00> : vector<64x16xf32>
    %75 = tpu.matmul %72, %74, %cst_96 {dimension_numbers = #tpu.dot_dimension_numbers<[1], [0], [0], [1], [0, 0, 1, 1], [], []>} : vector<64x48xf32>, vector<48x16xf32>, vector<64x16xf32> -> vector<64x16xf32>
    %76 = arith.addf %70, %75 : vector<64x16xf32>
    %c0_97 = arith.constant 0 : index
    %c0_98 = arith.constant 0 : index
    %77 = vector.load %arg4[%c0_97, %c0_98] : memref<1x16xf32, #tpu.memory_space<vmem>>, vector<1x16xf32>
    %78 = vector.broadcast %77 : vector<1x16xf32> to vector<64x16xf32>
    %79 = arith.mulf %76, %78 : vector<64x16xf32>
    %c0_99 = arith.constant 0 : index
    %c0_100 = arith.constant 0 : index
    %80 = vector.load %arg5[%c0_99, %c0_100] : memref<1x16xf32, #tpu.memory_space<vmem>>, vector<1x16xf32>
    %81 = vector.broadcast %80 : vector<1x16xf32> to vector<64x16xf32>
    %82 = arith.addf %79, %81 : vector<64x16xf32>
    %cst_101 = arith.constant 0.000000e+00 : f32
    %83 = vector.broadcast %cst_101 : f32 to vector<64x16xf32>
    %84 = arith.maximumf %82, %83 : vector<64x16xf32>
    %c0_102 = arith.constant 0 : index
    %c0_103 = arith.constant 0 : index
    %c0_104 = arith.constant 0 : index
    %85 = vector.load %arg6[%c0_102, %c0_103, %c0_104] : memref<1x64x16xf32, #tpu.memory_space<vmem>>, vector<1x64x16xf32>
    %86 = vector.shape_cast %85 : vector<1x64x16xf32> to vector<64x16xf32>
    %87 = vector.shape_cast %84 : vector<64x16xf32> to vector<1x64x16xf32>
    tpu.vector_store %arg6[%c0_102, %c0_103, %c0_104], %87 {strides = array<i32>} : memref<1x64x16xf32, #tpu.memory_space<vmem>>, vector<1x64x16xf32>,
    return
  }
  func.func @transform_0(%arg0: i32) -> (i32, i32, i32, i32) {
    %c0_i32 = arith.constant 0 : i32
    %c0_i32_0 = arith.constant 0 : i32
    %c0_i32_1 = arith.constant 0 : i32
    %c0_i32_2 = arith.constant 0 : i32
    return %arg0, %c0_i32, %c0_i32_0, %c0_i32_1 : i32, i32, i32, i32
  }
  func.func @transform_1(%arg0: i32) -> (i32, i32, i32, i32) {
    %c0_i32 = arith.constant 0 : i32
    %c0_i32_0 = arith.constant 0 : i32
    %c0_i32_1 = arith.constant 0 : i32
    %c0_i32_2 = arith.constant 0 : i32
    return %arg0, %c0_i32, %c0_i32_0, %c0_i32_1 : i32, i32, i32, i32
  }
  func.func @transform_2(%arg0: i32) -> (i32, i32, i32, i32) {
    %c0_i32 = arith.constant 0 : i32
    %c0_i32_0 = arith.constant 0 : i32
    %c0_i32_1 = arith.constant 0 : i32
    %c0_i32_2 = arith.constant 0 : i32
    %c0_i32_3 = arith.constant 0 : i32
    return %c0_i32, %c0_i32_0, %c0_i32_1, %c0_i32_2 : i32, i32, i32, i32
  }
  func.func @transform_3(%arg0: i32) -> (i32, i32) {
    %c0_i32 = arith.constant 0 : i32
    %c0_i32_0 = arith.constant 0 : i32
    %c0_i32_1 = arith.constant 0 : i32
    return %c0_i32, %c0_i32_0 : i32, i32
  }
  func.func @transform_4(%arg0: i32) -> (i32, i32) {
    %c0_i32 = arith.constant 0 : i32
    %c0_i32_0 = arith.constant 0 : i32
    %c0_i32_1 = arith.constant 0 : i32
    return %c0_i32, %c0_i32_0 : i32, i32
  }
  func.func @transform_5(%arg0: i32) -> (i32, i32, i32) {
    %c0_i32 = arith.constant 0 : i32
    %c0_i32_0 = arith.constant 0 : i32
    %c0_i32_1 = arith.constant 0 : i32
    return %arg0, %c0_i32, %c0_i32_0 : i32, i32, i32
  }
}

</mosaic_0001>

<bundles_post_ra>
// kernel: tpu_custom_call.1
= control target key start
LH: loop header
LB: loop body
LE: loop exit
PB: predicated region body
PF: predicated region fallthrough
CT: control target
= control target key end

     0   :  { %s1429_s18 = smov 0   ;;  %s1917_s0 = inlined_call_operand.vmem [shape: f32[2,8,8,16], index: 0, kind: input, shape index: {}]   ;;  %s1918_s1 = inlined_call_operand.vmem [shape: f32[2,8,8,32], index: 1, kind: input, shape index: {}]   ;;  %s1919_s2 = inlined_call_operand.vmem [shape: f32[3,3,48,16], index: 2, kind: input, shape index: {}]   ;;  %s1920_s3 = inlined_call_operand.vmem [shape: f32[1,16], index: 3, kind: input, shape index: {}]   ;;  %s1921_s4 = inlined_call_operand.vmem [shape: f32[1,16], index: 4, kind: input, shape index: {}]   ;;  %s1922_s5 = inlined_call_operand.vmem [shape: f32[2,64,16], index: 5, kind: output, shape index: {}]  }
   0x1 LB: > { %s1223_s19 = sadd.s32 4294967295, %s1395_s18   ;;  %p1227_p0 = scmp.ge.s32.totalorder %s1395_s18, 1  ;;  %s1395_s18 = sphi %s1429_s18, %s15_s18  }
   0x2   : > { %p197_p1 = scmp.lt.s32.totalorder %s1395_s18, 3 }
   0x4   : > { %p198_p2 = pnand %p1227_p0, %p197_p1 }
   0x5   : > { %p230_p3 = scmp.lt.s32.totalorder (!%p198_p2), %s1223_s19, 1  ;;  %s1397_s28 = smov (!%p198_p2), 16  }
   0x6   : > { %201 = sbr.rel (%p198_p2) target bundleno = 426 (0x1aa), region = 40 }
   0xb   : > { %v1239_v0 = vld [vmem:[%s1919_s2 + $0x58] sm:$0xff]  ;;  %v1238_v1 = vld [vmem:[%s1919_s2 + $0x50] sm:$0xff]  ;;  %s1924_s19 = smov (!%p230_p3, %s1223_s19), 1  ;;  %vm282_vm0 = vcmask 130048   ;;  %vm252_vm1 = vcmask 385024   ;;  %v1237_v13 = vld [vmem:[%s1919_s2 + $0x48] sm:$0xff] }
   0xc   : > { %1359 = vmatpush.msra.mxu1 %v1239_v0  ;;  %1360 = vmatpush.msra.mxu2 %v1239_v0  ;;  %s1443_s24 = sshll.u32 %s1924_s19, 6  ;;  %v1236_v14 = vld [vmem:[%s1919_s2 + $0x40] sm:$0xff]  ;;  %v1398_v15 = vmov 0.0   ;;  %v1235_v16 = vld [vmem:[%s1919_s2 + $0x38] sm:$0xff]  ;;  %v1234_v17 = vld [vmem:[%s1919_s2 + $0x30] sm:$0xff]  ;;  %vm331_vm2 = vcmask 392320  }
   0xd   : > { %403 = vmatpush.msra.mxu0 %v1239_v0  ;;  %1361 = vmatpush.msra.mxu3 %v1239_v0  ;;  %s239_s27 = scalar_lea.vmem %s1918_s1, %s1443_s24  ;;  %s1453_s6 = scalar_lea.vmem %s1917_s0, %s1443_s24  ;;  %254 = vst.msk [vmem:[#allocation2 + $0x10] sm:$0x1] %vm252_vm1, %v1398_v15  ;;  %vm245_vm3 = vcmask 392192   ;;  %v353_v22 = vld [vmem:[%s1919_s2 + $0x28] sm:$0xff]  ;;  %v352_v24 = vld [vmem:[%s1919_s2 + $0x20] sm:$0xff]  ;;  %vm247_vm4 = vcmask 386048  }
   0xe   : > { %1362 = vmatpush.msra.mxu1 %v1238_v1  ;;  %1363 = vmatpush.msra.mxu2 %v1238_v1  ;;  %v294_v2 = vld [vmem:[%s239_s27 + $0x18] sm:$0xff]  ;;  %v292_v3 = vld [vmem:[%s239_s27 + $0x8] sm:$0xff]  ;;  %v297_v4 = vld [vmem:[%s239_s27 + $0x30] sm:$0xff]  ;;  %255 = vst.msk [vmem:[#allocation2 + $0x20] sm:$0x1] %vm252_vm1, %v1398_v15  ;;  %s1860_s30 = scalar_lea.vmem %s1922_s5, %s1443_s24 }
   0xf   : > { %404 = vmatpush.msra.mxu0 %v1238_v1  ;;  %1364 = vmatpush.msra.mxu3 %v1238_v1  ;;  %v296_v5 = vld [vmem:[%s239_s27 + $0x28] sm:$0xff]  ;;  %v295_v6 = vld [vmem:[%s239_s27 + $0x20] sm:$0xff]  ;;  %v293_v7 = vld [vmem:[%s239_s27 + $0x10] sm:$0xff]  ;;  %256 = vst.msk [vmem:[#allocation2 + $0x30] sm:$0x1] %vm252_vm1, %v1398_v15 }
  0x10   : > { %313 = vrot.lane.b32.xlu0 %v294_v2, %s1397_s28  ;;  %309 = vrot.lane.b32.xlu1 %v292_v3, %s1397_s28  ;;  %v291_v8 = vld [vmem:[%s239_s27] sm:$0xff]  ;;  %v298_v9 = vld [vmem:[%s239_s27 + $0x38] sm:$0xff]  ;;  %257 = vst.msk [vmem:[#allocation2 + $0x40] sm:$0x1] %vm252_vm1, %v1398_v15 }
  0x11   : > { %319 = vrot.lane.b32.xlu2 %v297_v4, %s1397_s28  ;;  %v279_v10 = vld [vmem:[%s1453_s6 + $0x30] sm:$0xff]  ;;  %v276_v11 = vld [vmem:[%s1453_s6 + $0x18] sm:$0xff]  ;;  %v274_v12 = vld [vmem:[%s1453_s6 + $0x8] sm:$0xff]  ;;  %1365 = vmatpush.msra.mxu1 %v1237_v13  ;;  %258 = vst.msk [vmem:[#allocation2 + $0x50] sm:$0x1] %vm252_vm1, %v1398_v15 }
  0x12   : > { %289 = vst.msk [vmem:[#allocation2 + $0x71] sm:$0xff] %vm282_vm0, %v279_v10  ;;  %1366 = vmatpush.msra.mxu2 %v1237_v13  ;;  %405 = vmatpush.msra.mxu0 %v1237_v13  ;;  %v278_v18 = vld [vmem:[%s1453_s6 + $0x28] sm:$0xff]  ;;  %v275_v19 = vld [vmem:[%s1453_s6 + $0x10] sm:$0xff]  ;;  %v277_v20 = vld [vmem:[%s1453_s6 + $0x20] sm:$0xff] }
  0x13   : > { %286 = vst.msk [vmem:[#allocation2 + $0x41] sm:$0xff] %vm282_vm0, %v276_v11  ;;  %1367 = vmatpush.msra.mxu3 %v1237_v13  ;;  %1368 = vmatpush.msra.mxu1 %v1236_v14  ;;  %v1261_v23 = vld [vmem:[%s1919_s2 + $0x88] sm:$0xff]  ;;  %v1260_v25 = vld [vmem:[%s1919_s2 + $0x80] sm:$0xff]  ;;  %v1275_v28 = vld [vmem:[%s1919_s2 + $0xb8] sm:$0xff] }
  0x14   : > { %284 = vst.msk [vmem:[#allocation2 + $0x21] sm:$0xff] %vm282_vm0, %v274_v12  ;;  %1369 = vmatpush.msra.mxu2 %v1236_v14  ;;  %406 = vmatpush.msra.mxu0 %v1236_v14  ;;  %v273_v26 = vld [vmem:[%s1453_s6] sm:$0xff]  ;;  %v351_v29 = vld [vmem:[%s1919_s2 + $0x18] sm:$0xff]  ;;  %v350_v31 = vld [vmem:[%s1919_s2 + $0x10] sm:$0xff] }
  0x15   : > { %1370 = vmatpush.msra.mxu3 %v1236_v14  ;;  %1371 = vmatpush.msra.mxu1 %v1235_v16  ;;  %259 = vst.msk [vmem:[#allocation2 + $0x60] sm:$0x1] %vm252_vm1, %v1398_v15  ;;  %v1259_v30 = vld [vmem:[%s1919_s2 + $0x78] sm:$0xff]  ;;  %v1258_v32 = vld [vmem:[%s1919_s2 + $0x70] sm:$0xff]  ;;  %v349_v34 = vld [vmem:[%s1919_s2 + $0x8] sm:$0xff] }
  0x16   : > { %1372 = vmatpush.msra.mxu2 %v1235_v16  ;;  %407 = vmatpush.msra.mxu0 %v1235_v16  ;;  %260 = vst.msk [vmem:[#allocation2 + $0x70] sm:$0x1] %vm252_vm1, %v1398_v15  ;;  %v1274_v33 = vld [vmem:[%s1919_s2 + $0xb0] sm:$0xff]  ;;  %v1289_v35 = vld [vmem:[%s1919_s2 + $0xe8] sm:$0xff]  ;;  %v348_v39 = vld [vmem:[%s1919_s2] sm:$0xff] }
  0x17   : > { %1373 = vmatpush.msra.mxu3 %v1235_v16  ;;  %1374 = vmatpush.msra.mxu1 %v1234_v17  ;;  %288 = vst.msk [vmem:[#allocation2 + $0x61] sm:$0xff] %vm282_vm0, %v278_v18  ;;  %v1257_v37 = vld [vmem:[%s1919_s2 + $0x68] sm:$0xff]  ;;  %v1288_v40 = vld [vmem:[%s1919_s2 + $0xe0] sm:$0xff]  ;;  %v1287_v43 = vld [vmem:[%s1919_s2 + $0xd8] sm:$0xff] }
  0x18   : > { %317 = vrot.lane.b32.xlu0 %v296_v5, %s1397_s28  ;;  %315 = vrot.lane.b32.xlu1 %v295_v6, %s1397_s28  ;;  %285 = vst.msk [vmem:[#allocation2 + $0x31] sm:$0xff] %vm282_vm0, %v275_v19  ;;  %v1273_v38 = vld [vmem:[%s1919_s2 + $0xa8] sm:$0xff]  ;;  %v1256_v41 = vld [vmem:[%s1919_s2 + $0x60] sm:$0xff] }
  0x19   : > { %311 = vrot.lane.b32.xlu2 %v293_v7, %s1397_s28  ;;  %1375 = vmatpush.msra.mxu2 %v1234_v17  ;;  %287 = vst.msk [vmem:[#allocation2 + $0x51] sm:$0xff] %vm282_vm0, %v277_v20  ;;  %v1272_v42 = vld [vmem:[%s1919_s2 + $0xa0] sm:$0xff]  ;;  %v1271_v44 = vld [vmem:[%s1919_s2 + $0x98] sm:$0xff]  ;;  %v1286_v45 = vld [vmem:[%s1919_s2 + $0xd0] sm:$0xff] }
  0x1a   : > { %408 = vmatpush.msra.mxu0 %v1234_v17  ;;  %1376 = vmatpush.msra.mxu3 %v1234_v17  ;;  %246 = vst.msk [vmem:[#allocation2] sm:$0xff] %vm245_vm3, %v1398_v15  ;;  %v1285_v46 = vld [vmem:[%s1919_s2 + $0xc8] sm:$0xff]  ;;  %v1270_v47 = vld [vmem:[%s1919_s2 + $0x90] sm:$0xff]  ;;  %v1284_v48 = vld [vmem:[%s1919_s2 + $0xc0] sm:$0xff] }
  0x1b   : > { %468 = vmatpush.msrb.mxu1 %v353_v22  ;;  %548 = vmatpush.msrb.mxu2 %v1261_v23  ;;  %248 = vst.msk [vmem:[#allocation2 + $0x8] sm:$0x3] %vm247_vm4, %v1398_v15  ;;  %v1317_v51 = vld [vmem:[%s1919_s2 + $0x148] sm:$0xff]  ;;  %v1303_v55 = vld [vmem:[%s1919_s2 + $0x118] sm:$0xff]  ;;  %v1316_v58 = vld [vmem:[%s1919_s2 + $0x140] sm:$0xff] }
  0x1c   : > { %250 = vst.msk [vmem:[#allocation2 + $0x90] sm:$0xff] %vm245_vm3, %v1398_v15  ;;  %636 = vmatpush.msrb.mxu3 %v1275_v28  ;;  %724 = vmatpush.msrb.mxu0 %v1289_v35  ;;  %v1345_v57 = vld [vmem:[%s1919_s2 + $0x1a8] sm:$0xff]  ;;  %v1302_v59 = vld [vmem:[%s1919_s2 + $0x110] sm:$0xff]  ;;  %v1331_v63 = vld [vmem:[%s1919_s2 + $0x178] sm:$0xff] }
  0x1d   : > { %469 = vmatpush.msrb.mxu1 %v352_v24  ;;  %549 = vmatpush.msrb.mxu2 %v1260_v25  ;;  %251 = vst.msk [vmem:[#allocation2 + $0x98] sm:$0x3] %vm247_vm4, %v1398_v15  ;;  %v1330_v1 = vld [vmem:[%s1919_s2 + $0x170] sm:$0xff]  ;;  %v1344_v2 = vld [vmem:[%s1919_s2 + $0x1a0] sm:$0xff]  ;;  %v1315_v3 = vld [vmem:[%s1919_s2 + $0x138] sm:$0xff] }
  0x1e   : > { %283 = vst.msk [vmem:[#allocation2 + $0x11] sm:$0xff] %vm282_vm0, %v273_v26  ;;  %637 = vmatpush.msrb.mxu3 %v1274_v33  ;;  %725 = vmatpush.msrb.mxu0 %v1288_v40  ;;  %v1329_v4 = vld [vmem:[%s1919_s2 + $0x168] sm:$0xff]  ;;  %v1314_v10 = vld [vmem:[%s1919_s2 + $0x130] sm:$0xff]  ;;  %v1343_v11 = vld [vmem:[%s1919_s2 + $0x198] sm:$0xff] }
  0x1f   : > { %253 = vst.msk [vmem:[#allocation2] sm:$0x1] %vm252_vm1, %v1398_v15  ;;  %470 = vmatpush.msrb.mxu1 %v351_v29  ;;  %550 = vmatpush.msrb.mxu2 %v1259_v30  ;;  %v1328_v14 = vld [vmem:[%s1919_s2 + $0x160] sm:$0xff]  ;;  %v1342_v18 = vld [vmem:[%s1919_s2 + $0x190] sm:$0xff]  ;;  %v1313_v19 = vld [vmem:[%s1919_s2 + $0x128] sm:$0xff] }
  0x20   : > { %307 = vrot.lane.b32.xlu0 %v291_v8, %s1397_s28  ;;  %321 = vrot.lane.b32.xlu1 %v298_v9, %s1397_s28  ;;  %261 = vst.msk [vmem:[#allocation2 + $0x80] sm:$0x1] %vm252_vm1, %v1398_v15  ;;  %v1301_v9 = vld [vmem:[%s1919_s2 + $0x108] sm:$0xff]  ;;  %v1327_v20 = vld [vmem:[%s1919_s2 + $0x158] sm:$0xff] }
  0x21   : > { %471 = vmatpush.msrb.mxu1 %v350_v31  ;;  %262 = vst.msk [vmem:[#allocation2 + $0x90] sm:$0x1] %vm252_vm1, %v1398_v15  ;;  %551 = vmatpush.msrb.mxu2 %v1258_v32  ;;  %v1299_v22 = vld [vmem:[%s1919_s2 + $0xf8] sm:$0xff]  ;;  %v1341_v26 = vld [vmem:[%s1919_s2 + $0x188] sm:$0xff]  ;;  %v1326_v28 = vld [vmem:[%s1919_s2 + $0x150] sm:$0xff] }
  0x22   : > { %v354_v36 = vld [vmem:[#allocation2 + $0x1] sm:$0xff]  ;;  %263 = vst.msk [vmem:[#allocation2 + $0x9] sm:$0x1] %vm252_vm1, %v1398_v15  ;;  %638 = vmatpush.msrb.mxu3 %v1273_v38  ;;  %726 = vmatpush.msrb.mxu0 %v1287_v43  ;;  %v280_v23 = vld [vmem:[%s1453_s6 + $0x38] sm:$0xff]  ;;  %v1298_v29 = vld [vmem:[%s1919_s2 + $0xf0] sm:$0xff] }
  0x23   : > { %1240 = vmatmul.msk.f32.vlgmr.msra.gmra.mxu0 %vm245_vm3, %v354_v36  ;;  %472 = vmatpush.msrb.mxu1 %v349_v34  ;;  %264 = vst.msk [vmem:[#allocation2 + $0x19] sm:$0x1] %vm252_vm1, %v1398_v15  ;;  %v1340_v32 = vld [vmem:[%s1919_s2 + $0x180] sm:$0xff] }
  0x24   : > { %552 = vmatpush.msrb.mxu2 %v1257_v37  ;;  %265 = vst.msk [vmem:[#allocation2 + $0x29] sm:$0x1] %vm252_vm1, %v1398_v15  ;;  %639 = vmatpush.msrb.mxu3 %v1272_v42 }
  0x25   : > { %473 = vmatpush.msrb.mxu1 %v348_v39  ;;  %266 = vst.msk [vmem:[#allocation2 + $0x39] sm:$0x1] %vm252_vm1, %v1398_v15  ;;  %727 = vmatpush.msrb.mxu0 %v1286_v45 }
  0x26   : > { %553 = vmatpush.msrb.mxu2 %v1256_v41  ;;  %267 = vst.msk [vmem:[#allocation2 + $0x49] sm:$0x1] %vm252_vm1, %v1398_v15  ;;  %640 = vmatpush.msrb.mxu3 %v1271_v44  ;;  %v340_v5 = vld [vmem:[#allocation2] sm:$0xff] }
  0x27   : > { %268 = vst.msk [vmem:[#allocation2 + $0x59] sm:$0x1] %vm252_vm1, %v1398_v15  ;;  %728 = vmatpush.msrb.mxu0 %v1285_v46 }
  0x28   : > { %269 = vst.msk [vmem:[#allocation2 + $0x69] sm:$0x1] %vm252_vm1, %v1398_v15  ;;  %641 = vmatpush.msrb.mxu3 %v1270_v47  ;;  %v859_v45 = vld [vmem:[#allocation2 + $0x90] sm:$0xff] }
  0x29   : > { %270 = vst.msk [vmem:[#allocation2 + $0x79] sm:$0x1] %vm252_vm1, %v1398_v15  ;;  %729 = vmatpush.msrb.mxu0 %v1284_v48  ;;  %v499_v6 = vld [vmem:[#allocation2 + $0x2] sm:$0xff] }
  0x2a   : > { %271 = vst.msk [vmem:[#allocation2 + $0x89] sm:$0x1] %vm252_vm1, %v1398_v15 }
  0x2b   : > { %272 = vst.msk [vmem:[#allocation2 + $0x99] sm:$0x1] %vm252_vm1, %v1398_v15  ;;  %1077 = vmatpush.msra.mxu0 %v1345_v57  ;;  %v1300_v15 = vld [vmem:[%s1919_s2 + $0x100] sm:$0xff] }
  0x2c   : > { %290 = vst.msk [vmem:[#allocation2 + $0x81] sm:$0xff] %vm282_vm0, %v280_v23 }
  0x2d   : > { %1078 = vmatpush.msra.mxu0 %v1344_v2 }
  0x2f   : > { %1079 = vmatpush.msra.mxu0 %v1343_v11 }
  0x31   : > { %1080 = vmatpush.msra.mxu0 %v1342_v18 }
  0x33   : > { %1081 = vmatpush.msra.mxu0 %v1341_v26 }
  0x35   : > { %1082 = vmatpush.msra.mxu0 %v1340_v32 }
  0x6b   : > { %v320_v21 = vpop.permute.xlu2 %319 }
  0x6c   : > { %338 = vst.msk [vmem:[#allocation2 + $0x71] sm:$0xff] %vm331_vm2, %v320_v21 }
  0x73   : > { %v312_v27 = vpop.permute.xlu2 %311  ;;  %v1657_v8 = vld [vmem:[#allocation2 + $0x71] sm:$0xff] }
  0x74   : > { %334 = vst.msk [vmem:[#allocation2 + $0x31] sm:$0xff] %vm331_vm2, %v312_v27  ;;  %v1312_v27 = vld [vmem:[%s1919_s2 + $0x120] sm:$0xff]  ;;  %v347_v37 = vld [vmem:[#allocation2 + $0x70] sm:$0xff] }
  0x75   : > { %v506_v38 = vld [vmem:[#allocation2 + $0x72] sm:$0xff] }
  0x7b   : > { %v1629_v60 = vld [vmem:[#allocation2 + $0x31] sm:$0xff] }
  0x7c   : > { %v343_v24 = vld [vmem:[#allocation2 + $0x30] sm:$0xff] }
  0x7d   : > { %v502_v25 = vld [vmem:[#allocation2 + $0x32] sm:$0xff] }
  0x82   : > { %v314_v49 = vpop.permute.xlu0 %313  ;;  %v310_v50 = vpop.permute.xlu1 %309 }
  0x83   : > { %335 = vst.msk [vmem:[#allocation2 + $0x41] sm:$0xff] %vm331_vm2, %v314_v49 }
  0x84   : > { %333 = vst.msk [vmem:[#allocation2 + $0x21] sm:$0xff] %vm331_vm2, %v310_v50  ;;  %v947_v50 = vld [vmem:[#allocation2 + $0x91] sm:$0xff] }
  0x8a   : > { %v318_v52 = vpop.permute.xlu0 %317  ;;  %v316_v53 = vpop.permute.xlu1 %315  ;;  %v1607_v54 = vld [vmem:[#allocation2 + $0x41] sm:$0xff] }
  0x8b   : > { %337 = vst.msk [vmem:[#allocation2 + $0x61] sm:$0xff] %vm331_vm2, %v318_v52  ;;  %v1613_v56 = vld [vmem:[#allocation2 + $0x21] sm:$0xff]  ;;  %1244 = vmatmul.msk.f32.vlgmr.msra.gmra.mxu2 %vm245_vm3, %v1607_v54 }
  0x8c   : > { %336 = vst.msk [vmem:[#allocation2 + $0x51] sm:$0xff] %vm331_vm2, %v316_v53  ;;  %1242 = vmatmul.msk.f32.vlgmr.msra.gmra.mxu1 %vm245_vm3, %v1613_v56  ;;  %901 = vmatpush.msra.mxu2 %v1317_v51  ;;  %v1686_v16 = vld [vmem:[#allocation2 + $0x20] sm:$0xff]  ;;  %v1035_v51 = vld [vmem:[#allocation2 + $0x92] sm:$0xff] }
  0x8d   : > { %812 = vmatpush.msra.mxu1 %v1303_v55  ;;  %v1688_v17 = vld [vmem:[#allocation2 + $0x22] sm:$0xff] }
  0x8e   : > { %902 = vmatpush.msra.mxu2 %v1316_v58  ;;  %v344_v30 = vld [vmem:[#allocation2 + $0x40] sm:$0xff] }
  0x8f   : > { %813 = vmatpush.msra.mxu1 %v1302_v59  ;;  %v503_v31 = vld [vmem:[#allocation2 + $0x42] sm:$0xff] }
  0x90   : > { %903 = vmatpush.msra.mxu2 %v1315_v3 }
  0x91   : > { %814 = vmatpush.msra.mxu1 %v1301_v9 }
  0x92   : > { %v308_v61 = vpop.permute.xlu0 %307  ;;  %v1631_v62 = vld [vmem:[#allocation2 + $0x61] sm:$0xff]  ;;  %904 = vmatpush.msra.mxu2 %v1314_v10  ;;  %v322_v21 = vpop.permute.xlu1 %321 }
  0x93   : > { %332 = vst.msk [vmem:[#allocation2 + $0x11] sm:$0xff] %vm331_vm2, %v308_v61  ;;  %v1637_v0 = vld [vmem:[#allocation2 + $0x51] sm:$0xff]  ;;  %1246 = vmatmul.msk.f32.vlgmr.msra.gmra.mxu3 %vm245_vm3, %v1631_v62  ;;  %815 = vmatpush.msra.mxu1 %v1300_v15  ;;  %v346_v35 = vld [vmem:[#allocation2 + $0x60] sm:$0xff] }
  0x94   : > { %1243 = vmatmul.msk.f32.gmra.mxu1 %vm245_vm3, %v1629_v60  ;;  %1245 = vmatmul.msk.f32.gmra.mxu2 %vm245_vm3, %v1637_v0  ;;  %339 = vst.msk [vmem:[#allocation2 + $0x81] sm:$0xff] %vm331_vm2, %v322_v21  ;;  %v345_v33 = vld [vmem:[#allocation2 + $0x50] sm:$0xff]  ;;  %v505_v36 = vld [vmem:[#allocation2 + $0x62] sm:$0xff] }
  0x95   : > { %989 = vmatpush.msra.mxu3 %v1331_v63  ;;  %905 = vmatpush.msra.mxu2 %v1313_v19  ;;  %v504_v34 = vld [vmem:[#allocation2 + $0x52] sm:$0xff] }
  0x96   : > { %816 = vmatpush.msra.mxu1 %v1299_v22 }
  0x97   : > { %990 = vmatpush.msra.mxu3 %v1330_v1  ;;  %906 = vmatpush.msra.mxu2 %v1312_v27 }
  0x98   : > { %817 = vmatpush.msra.mxu1 %v1298_v29 }
  0x99   : > { %991 = vmatpush.msra.mxu3 %v1329_v4 }
  0x9a   : > { %v355_v7 = vld [vmem:[#allocation2 + $0x11] sm:$0xff] }
  0x9b   : > { %1241 = vmatmul.msk.f32.gmra.mxu0 %vm245_vm3, %v355_v7  ;;  %1247 = vmatmul.msk.f32.gmra.mxu3 %vm245_vm3, %v1657_v8  ;;  %v341_v12 = vld [vmem:[#allocation2 + $0x10] sm:$0xff]  ;;  %v594_v39 = vld [vmem:[#allocation2 + $0x80] sm:$0xff] }
  0x9c   : > { %1248 = vmatmul.msk.f32.vlgmr.msrb.gmra.mxu1 %vm245_vm3, %v340_v5  ;;  %1262 = vmatmul.msk.f32.vlgmr.msrb.gmra.mxu2 %vm245_vm3, %v499_v6  ;;  %v1673_v13 = vld [vmem:[#allocation2 + $0x12] sm:$0xff]  ;;  %v682_v40 = vld [vmem:[#allocation2 + $0x81] sm:$0xff] }
  0x9d   : > { %992 = vmatpush.msra.mxu3 %v1328_v14  ;;  %v770_v46 = vld [vmem:[#allocation2 + $0x82] sm:$0xff] }
  0x9f   : > { %993 = vmatpush.msra.mxu3 %v1327_v20 }
  0xa0   : > { %v410_v43 = vpop.f32.mrf.mxu0 }
  0xa1   : > { %994 = vmatpush.msra.mxu3 %v1326_v28 }
  0xa3   : > { %1276 = vmatmul.msk.f32.vlgmr.msrb.gmra.mxu3 %vm245_vm3, %v341_v12  ;;  %1290 = vmatmul.msk.f32.vlgmr.msrb.gmra.mxu0 %vm245_vm3, %v355_v7 }
  0xa4   : > { %1249 = vmatmul.msk.f32.gmra.mxu1 %vm245_vm3, %v341_v12  ;;  %1263 = vmatmul.msk.f32.gmra.mxu2 %vm245_vm3, %v1673_v13 }
  0xab   : > { %1277 = vmatmul.msk.f32.gmra.mxu3 %vm245_vm3, %v1686_v16  ;;  %1291 = vmatmul.msk.f32.gmra.mxu0 %vm245_vm3, %v1613_v56 }
  0xac   : > { %1250 = vmatmul.msk.f32.gmra.mxu1 %vm245_vm3, %v1686_v16  ;;  %1264 = vmatmul.msk.f32.gmra.mxu2 %vm245_vm3, %v1688_v17 }
  0xb3   : > { %1278 = vmatmul.msk.f32.gmra.mxu3 %vm245_vm3, %v343_v24  ;;  %1292 = vmatmul.msk.f32.gmra.mxu0 %vm245_vm3, %v1629_v60 }
  0xb4   : > { %1251 = vmatmul.msk.f32.gmra.mxu1 %vm245_vm3, %v343_v24  ;;  %1265 = vmatmul.msk.f32.gmra.mxu2 %vm245_vm3, %v502_v25 }
  0xbb   : > { %1279 = vmatmul.msk.f32.gmra.mxu3 %vm245_vm3, %v344_v30  ;;  %1293 = vmatmul.msk.f32.gmra.mxu0 %vm245_vm3, %v1607_v54 }
  0xbc   : > { %1252 = vmatmul.msk.f32.gmra.mxu1 %vm245_vm3, %v344_v30  ;;  %1266 = vmatmul.msk.f32.gmra.mxu2 %vm245_vm3, %v503_v31 }
  0xc3   : > { %1280 = vmatmul.msk.f32.gmra.mxu3 %vm245_vm3, %v345_v33  ;;  %1294 = vmatmul.msk.f32.gmra.mxu0 %vm245_vm3, %v1637_v0 }
  0xc4   : > { %1253 = vmatmul.msk.f32.gmra.mxu1 %vm245_vm3, %v345_v33  ;;  %1267 = vmatmul.msk.f32.gmra.mxu2 %vm245_vm3, %v504_v34 }
  0xcb   : > { %1281 = vmatmul.msk.f32.gmra.mxu3 %vm245_vm3, %v346_v35  ;;  %1295 = vmatmul.msk.f32.gmra.mxu0 %vm245_vm3, %v1631_v62 }
  0xcc   : > { %1254 = vmatmul.msk.f32.gmra.mxu1 %vm245_vm3, %v346_v35  ;;  %1268 = vmatmul.msk.f32.gmra.mxu2 %vm245_vm3, %v505_v36 }
  0xd3   : > { %1282 = vmatmul.msk.f32.gmra.mxu3 %vm245_vm3, %v347_v37  ;;  %1296 = vmatmul.msk.f32.gmra.mxu0 %vm245_vm3, %v1657_v8 }
  0xd4   : > { %1255 = vmatmul.msk.f32.gmra.mxu1 %vm245_vm3, %v347_v37  ;;  %1269 = vmatmul.msk.f32.gmra.mxu2 %vm245_vm3, %v506_v38 }
  0xdb   : > { %1283 = vmatmul.msk.f32.gmra.mxu3 %vm245_vm3, %v594_v39  ;;  %1297 = vmatmul.msk.f32.gmra.mxu0 %vm245_vm3, %v682_v40 }
  0xdc   : > { %1304 = vmatmul.msk.f32.vlgmr.msra.gmra.mxu1 %vm245_vm3, %v1673_v13  ;;  %1318 = vmatmul.msk.f32.vlgmr.msra.gmra.mxu2 %vm245_vm3, %v1686_v16 }
  0xe3   : > { %1332 = vmatmul.msk.f32.vlgmr.msra.gmra.mxu3 %vm245_vm3, %v1613_v56  ;;  %1346 = vmatmul.msk.f32.vlgmr.msra.gmra.mxu0 %vm245_vm3, %v1688_v17 }
  0xe4   : > { %1305 = vmatmul.msk.f32.gmra.mxu1 %vm245_vm3, %v1688_v17  ;;  %1319 = vmatmul.msk.f32.gmra.mxu2 %vm245_vm3, %v343_v24 }
  0xeb   : > { %1333 = vmatmul.msk.f32.gmra.mxu3 %vm245_vm3, %v1629_v60  ;;  %1347 = vmatmul.msk.f32.gmra.mxu0 %vm245_vm3, %v502_v25 }
  0xec   : > { %1306 = vmatmul.msk.f32.gmra.mxu1 %vm245_vm3, %v502_v25  ;;  %1320 = vmatmul.msk.f32.gmra.mxu2 %vm245_vm3, %v344_v30 }
  0xf3   : > { %1334 = vmatmul.msk.f32.gmra.mxu3 %vm245_vm3, %v1607_v54  ;;  %1348 = vmatmul.msk.f32.gmra.mxu0 %vm245_vm3, %v503_v31 }
  0xf4   : > { %1307 = vmatmul.msk.f32.gmra.mxu1 %vm245_vm3, %v503_v31  ;;  %1321 = vmatmul.msk.f32.gmra.mxu2 %vm245_vm3, %v345_v33 }
  0xfb   : > { %1335 = vmatmul.msk.f32.gmra.mxu3 %vm245_vm3, %v1637_v0  ;;  %1349 = vmatmul.msk.f32.gmra.mxu0 %vm245_vm3, %v504_v34 }
  0xfc   : > { %1308 = vmatmul.msk.f32.gmra.mxu1 %vm245_vm3, %v504_v34  ;;  %1322 = vmatmul.msk.f32.gmra.mxu2 %vm245_vm3, %v346_v35 }
 0x103   : > { %1336 = vmatmul.msk.f32.gmra.mxu3 %vm245_vm3, %v1631_v62  ;;  %1350 = vmatmul.msk.f32.gmra.mxu0 %vm245_vm3, %v505_v36 }
 0x104   : > { %1309 = vmatmul.msk.f32.gmra.mxu1 %vm245_vm3, %v505_v36  ;;  %1323 = vmatmul.msk.f32.gmra.mxu2 %vm245_vm3, %v347_v37  ;;  %v1846_v37 = vld [vmem:[%s1920_s3] ss:$0 sm:$0xff] }
 0x109   : > { %v1786_v41 = vpop.f32.mrf.mxu1 }
 0x10b   : > { %1337 = vmatmul.msk.f32.gmra.mxu3 %vm245_vm3, %v1657_v8  ;;  %1351 = vmatmul.msk.f32.gmra.mxu0 %vm245_vm3, %v506_v38 }
 0x10c   : > { %1310 = vmatmul.msk.f32.gmra.mxu1 %vm245_vm3, %v506_v38  ;;  %1324 = vmatmul.msk.f32.gmra.mxu2 %vm245_vm3, %v594_v39 }
 0x10e   : > { %v1793_v42 = vpop.f32.mrf.mxu2 }
 0x111   : > { %v1795_v44 = vpop.f32.mrf.mxu1 }
 0x113   : > { %1338 = vmatmul.msk.f32.gmra.mxu3 %vm245_vm3, %v682_v40  ;;  %1352 = vmatmul.msk.f32.gmra.mxu0 %vm245_vm3, %v770_v46 }
 0x114   : > { %1311 = vmatmul.msk.f32.gmra.mxu1 %vm245_vm3, %v770_v46  ;;  %1325 = vmatmul.msk.f32.gmra.mxu2 %vm245_vm3, %v859_v45  ;;  %v1852_v45 = vld [vmem:[%s1921_s4] ss:$0 sm:$0xff] }
 0x116   : > { %v1801_v47 = vpop.f32.mrf.mxu3 }
 0x117   : > { %v1803_v48 = vpop.f32.mrf.mxu2 }
 0x118   : > { %v413_v49 = vpop.f32.mrf.mxu0 }
 0x119   : > { %v475_v52 = vpop.f32.mrf.mxu1 }
 0x11a   : > { %v476_v20 = vadd.f32 %v475_v52, %v410_v43 }
 0x11b   : > { %1339 = vmatmul.msk.f32.gmra.mxu3 %vm245_vm3, %v947_v50  ;;  %1353 = vmatmul.msk.f32.gmra.mxu0 %vm245_vm3, %v1035_v51 }
 0x11e   : > { %v1807_v53 = vpop.f32.mrf.mxu3 }
 0x11f   : > { %v555_v54 = vpop.f32.mrf.mxu2 }
 0x120   : > { %v731_v55 = vpop.f32.mrf.mxu0  ;;  %v579_v22 = vadd.f32 %v555_v54, %v476_v20 }
 0x121   : > { %v478_v56 = vpop.f32.mrf.mxu1 }
 0x122   : > { %v479_v27 = vadd.f32 %v478_v56, %v413_v49 }
 0x126   : > { %v643_v57 = vpop.f32.mrf.mxu3 }
 0x127   : > { %v558_v58 = vpop.f32.mrf.mxu2  ;;  %v667_v23 = vadd.f32 %v643_v57, %v579_v22 }
 0x128   : > { %v734_v59 = vpop.f32.mrf.mxu0  ;;  %v580_v30 = vadd.f32 %v558_v58, %v479_v27 }
 0x129   : > { %v481_v60 = vpop.f32.mrf.mxu1  ;;  %v755_v28 = vadd.f32 %v731_v55, %v667_v23 }
 0x12a   : > { %v482_v39 = vadd.f32 %v481_v60, %v1786_v41 }
 0x12e   : > { %v646_v61 = vpop.f32.mrf.mxu3 }
 0x12f   : > { %v561_v62 = vpop.f32.mrf.mxu2  ;;  %v668_v32 = vadd.f32 %v646_v61, %v580_v30 }
 0x130   : > { %v737_v63 = vpop.f32.mrf.mxu0  ;;  %v581_v49 = vadd.f32 %v561_v62, %v482_v39 }
 0x131   : > { %v484_v0 = vpop.f32.mrf.mxu1  ;;  %v756_v40 = vadd.f32 %v734_v59, %v668_v32 }
 0x132   : > { %v485_v60 = vadd.f32 %v484_v0, %v1795_v44 }
 0x136   : > { %v649_v1 = vpop.f32.mrf.mxu3 }
 0x137   : > { %v564_v2 = vpop.f32.mrf.mxu2  ;;  %v669_v52 = vadd.f32 %v649_v1, %v581_v49 }
 0x138   : > { %v1809_v3 = vpop.f32.mrf.mxu0  ;;  %v582_v20 = vadd.f32 %v564_v2, %v485_v60 }
 0x139   : > { %v1811_v4 = vpop.f32.mrf.mxu1  ;;  %v757_v61 = vadd.f32 %v737_v63, %v669_v52 }
 0x13a   : > { %v488_v44 = vadd.f32 %v1811_v4, %v1793_v42 }
 0x13e   : > { %v652_v5 = vpop.f32.mrf.mxu3 }
 0x13f   : > { %v1813_v6 = vpop.f32.mrf.mxu2  ;;  %v670_v23 = vadd.f32 %v652_v5, %v582_v20 }
 0x140   : > { %v1815_v7 = vpop.f32.mrf.mxu0  ;;  %v583_v5 = vadd.f32 %v1813_v6, %v488_v44 }
 0x141   : > { %v1817_v8 = vpop.f32.mrf.mxu1  ;;  %v758_v63 = vadd.f32 %v1809_v3, %v670_v23 }
 0x146   : > { %v1819_v9 = vpop.f32.mrf.mxu3 }
 0x147   : > { %v1821_v10 = vpop.f32.mrf.mxu2 }
 0x148   : > { %v1823_v11 = vpop.f32.mrf.mxu0 }
 0x149   : > { %v1825_v12 = vpop.f32.mrf.mxu1 }
 0x14e   : > { %v1827_v13 = vpop.f32.mrf.mxu3 }
 0x14f   : > { %v1829_v14 = vpop.f32.mrf.mxu2 }
 0x150   : > { %v1831_v15 = vpop.f32.mrf.mxu0 }
 0x151   : > { %v1833_v16 = vpop.f32.mrf.mxu1 }
 0x156   : > { %v1835_v17 = vpop.f32.mrf.mxu3 }
 0x157   : > { %v1837_v18 = vpop.f32.mrf.mxu2 }
 0x158   : > { %v1839_v19 = vpop.f32.mrf.mxu0 }
 0x159   : > { %v819_v21 = vpop.f32.mrf.mxu1 }
 0x15a   : > { %v843_v31 = vadd.f32 %v819_v21, %v755_v28 }
 0x15e   : > { %v1841_v24 = vpop.f32.mrf.mxu3 }
 0x15f   : > { %v908_v25 = vpop.f32.mrf.mxu2 }
 0x160   : > { %v1084_v26 = vpop.f32.mrf.mxu0  ;;  %v932_v33 = vadd.f32 %v908_v25, %v843_v31 }
 0x161   : > { %v822_v29 = vpop.f32.mrf.mxu1 }
 0x162   : > { %v844_v50 = vadd.f32 %v822_v29, %v756_v40  ;;  %v491_v40 = vadd.f32 %v1817_v8, %v1803_v48 }
 0x166   : > { %v996_v34 = vpop.f32.mrf.mxu3 }
 0x167   : > { %v911_v35 = vpop.f32.mrf.mxu2  ;;  %v1020_v36 = vadd.f32 %v996_v34, %v932_v33  ;;  %v671_v34 = vadd.f32 %v1819_v9, %v583_v5 }
 0x168   : > { %v1087_v38 = vpop.f32.mrf.mxu0  ;;  %v933_v54 = vadd.f32 %v911_v35, %v844_v50 }
 0x169   : > { %v1108_v43 = vadd.f32 %v1084_v26, %v1020_v36  ;;  %v825_v46 = vpop.f32.mrf.mxu1  ;;  %v759_v3 = vadd.f32 %v1815_v7, %v671_v34  ;;  %v494_v7 = vadd.f32 %v1825_v12, %v1801_v47 }
 0x16a   : > { %v845_v21 = vadd.f32 %v825_v46, %v757_v61  ;;  %v584_v46 = vadd.f32 %v1821_v10, %v491_v40 }
 0x16b   : > { %v1120_v51 = vmul.f32 %v1846_v37, %v1108_v43 }
 0x16d   : > { %v1132_v55 = vadd.f32 %v1852_v45, %v1120_v51  ;;  %v672_v51 = vadd.f32 %v1827_v13, %v584_v46 }
 0x16e   : > { %v999_v41 = vpop.f32.mrf.mxu3 }
 0x16f   : > { %v1140_v56 = vmax.f32 %v1132_v55, 0.0  ;;  %v914_v57 = vpop.f32.mrf.mxu2  ;;  %v1021_v58 = vadd.f32 %v999_v41, %v933_v54  ;;  %v760_v10 = vadd.f32 %v1823_v11, %v672_v51  ;;  %v497_v11 = vadd.f32 %v1833_v16, %v1807_v53 }
 0x170   : > { %v1090_v59 = vpop.f32.mrf.mxu0  ;;  %v934_v25 = vadd.f32 %v914_v57, %v845_v21  ;;  %v585_v57 = vadd.f32 %v1829_v14, %v494_v7 }
 0x171   : > { %1148 = vst.msk [vmem:[%s1860_s30] sm:$0xff] %vm282_vm0, %v1140_v56  ;;  %v1109_v62 = vadd.f32 %v1087_v38, %v1021_v58  ;;  %v828_v1 = vpop.f32.mrf.mxu1  ;;  %v586_v23 = vadd.f32 %v1837_v18, %v497_v11 }
 0x172   : > { %v846_v32 = vadd.f32 %v828_v1, %v758_v63  ;;  %v673_v60 = vadd.f32 %v1835_v17, %v585_v57 }
 0x173   : > { %v1121_v22 = vmul.f32 %v1846_v37, %v1109_v62 }
 0x174   : > { %v761_v14 = vadd.f32 %v1831_v15, %v673_v60 }
 0x175   : > { %v1133_v26 = vadd.f32 %v1852_v45, %v1121_v22 }
 0x176   : > { %v1002_v27 = vpop.f32.mrf.mxu3 }
 0x177   : > { %v1141_v28 = vmax.f32 %v1133_v26, 0.0  ;;  %v917_v29 = vpop.f32.mrf.mxu2  ;;  %v1022_v30 = vadd.f32 %v1002_v27, %v934_v25  ;;  %v674_v26 = vadd.f32 %v1841_v24, %v586_v23 }
 0x178   : > { %v1093_v31 = vpop.f32.mrf.mxu0  ;;  %v935_v35 = vadd.f32 %v917_v29, %v846_v32 }
 0x179   : > { %1149 = vst.msk [vmem:[%s1860_s30 + $0x8] sm:$0xff] %vm282_vm0, %v1141_v28  ;;  %v1110_v0 = vadd.f32 %v1090_v59, %v1022_v30  ;;  %v831_v2 = vpop.f32.mrf.mxu1  ;;  %v762_v15 = vadd.f32 %v1839_v19, %v674_v26 }
 0x17a   : > { %v847_v9 = vadd.f32 %v831_v2, %v759_v3 }
 0x17b   : > { %v1122_v33 = vmul.f32 %v1846_v37, %v1110_v0 }
 0x17d   : > { %v1134_v36 = vadd.f32 %v1852_v45, %v1122_v33 }
 0x17e   : > { %v1005_v38 = vpop.f32.mrf.mxu3 }
 0x17f   : > { %v1142_v39 = vmax.f32 %v1134_v36, 0.0  ;;  %v920_v42 = vpop.f32.mrf.mxu2  ;;  %v1023_v4 = vadd.f32 %v1005_v38, %v935_v35 }
 0x180   : > { %v1096_v43 = vpop.f32.mrf.mxu0  ;;  %v936_v52 = vadd.f32 %v920_v42, %v847_v9 }
 0x181   : > { %1150 = vst.msk [vmem:[%s1860_s30 + $0x10] sm:$0xff] %vm282_vm0, %v1142_v39  ;;  %v1111_v6 = vadd.f32 %v1093_v31, %v1023_v4  ;;  %v834_v50 = vpop.f32.mrf.mxu1 }
 0x182   : > { %v848_v58 = vadd.f32 %v834_v50, %v760_v10 }
 0x183   : > { %v1123_v49 = vmul.f32 %v1846_v37, %v1111_v6 }
 0x185   : > { %v1135_v54 = vadd.f32 %v1852_v45, %v1123_v49 }
 0x186   : > { %v1008_v55 = vpop.f32.mrf.mxu3 }
 0x187   : > { %v1143_v48 = vmax.f32 %v1135_v54, 0.0  ;;  %v923_v8 = vpop.f32.mrf.mxu2  ;;  %v1024_v41 = vadd.f32 %v1008_v55, %v936_v52 }
 0x188   : > { %v1099_v59 = vpop.f32.mrf.mxu0  ;;  %v937_v61 = vadd.f32 %v923_v8, %v848_v58 }
 0x189   : > { %1151 = vst.msk [vmem:[%s1860_s30 + $0x18] sm:$0xff] %vm282_vm0, %v1143_v48  ;;  %v1112_v56 = vadd.f32 %v1096_v43, %v1024_v41  ;;  %v837_v1 = vpop.f32.mrf.mxu1 }
 0x18a   : > { %v849_v17 = vadd.f32 %v837_v1, %v761_v14 }
 0x18b   : > { %v1124_v13 = vmul.f32 %v1846_v37, %v1112_v56 }
 0x18d   : > { %v1136_v62 = vadd.f32 %v1852_v45, %v1124_v13 }
 0x18e   : > { %v1011_v20 = vpop.f32.mrf.mxu3 }
 0x18f   : > { %v1144_v47 = vmax.f32 %v1136_v62, 0.0  ;;  %v1025_v12 = vadd.f32 %v1011_v20, %v937_v61  ;;  %v926_v21 = vpop.f32.mrf.mxu2 }
 0x190   : > { %v938_v27 = vadd.f32 %v926_v21, %v849_v17  ;;  %v1102_v29 = vpop.f32.mrf.mxu0 }
 0x191   : > { %1152 = vst.msk [vmem:[%s1860_s30 + $0x20] sm:$0xff] %vm282_vm0, %v1144_v47  ;;  %v1113_v22 = vadd.f32 %v1099_v59, %v1025_v12  ;;  %v840_v16 = vpop.f32.mrf.mxu1 }
 0x192   : > { %v850_v63 = vadd.f32 %v840_v16, %v762_v15 }
 0x193   : > { %v1125_v25 = vmul.f32 %v1846_v37, %v1113_v22 }
 0x195   : > { %v1137_v28 = vadd.f32 %v1852_v45, %v1125_v25 }
 0x196   : > { %v1014_v30 = vpop.f32.mrf.mxu3 }
 0x197   : > { %v1145_v31 = vmax.f32 %v1137_v28, 0.0  ;;  %v1026_v53 = vadd.f32 %v1014_v30, %v938_v27  ;;  %v929_v44 = vpop.f32.mrf.mxu2 }
 0x198   : > { %v939_v24 = vadd.f32 %v929_v44, %v850_v63  ;;  %v1105_v32 = vpop.f32.mrf.mxu0 }
 0x199   : > { %1153 = vst.msk [vmem:[%s1860_s30 + $0x28] sm:$0xff] %vm282_vm0, %v1145_v31  ;;  %v1114_v18 = vadd.f32 %v1102_v29, %v1026_v53 }
 0x19b   : > { %v1126_v0 = vmul.f32 %v1846_v37, %v1114_v18 }
 0x19d   : > { %v1138_v2 = vadd.f32 %v1852_v45, %v1126_v0 }
 0x19e   : > { %v1017_v5 = vpop.f32.mrf.mxu3 }
 0x19f   : > { %v1146_v33 = vmax.f32 %v1138_v2, 0.0  ;;  %v1027_v34 = vadd.f32 %v1017_v5, %v939_v24 }
 0x1a1   : > { %1154 = vst.msk [vmem:[%s1860_s30 + $0x30] sm:$0xff] %vm282_vm0, %v1146_v33  ;;  %v1115_v35 = vadd.f32 %v1105_v32, %v1027_v34 }
 0x1a3   : > { %v1127_v36 = vmul.f32 %v1846_v37, %v1115_v35 }
 0x1a5   : > { %v1139_v19 = vadd.f32 %v1852_v45, %v1127_v36 }
 0x1a7   : > { %v1147_v38 = vmax.f32 %v1139_v19, 0.0 }
 0x1a9   : > { %1155 = vst.msk [vmem:[%s1860_s30 + $0x38] sm:$0xff] %vm282_vm0, %v1147_v38 }
 0x1aa PF: > { %s15_s18 = sadd.s32 1, %s1395_s18  }
 0x1ab   : > { %p12_p4 = scmp.ge.s32.totalorder %s15_s18, 4  }
 0x1ad   :  { %14 = sbr.rel (!%p12_p4) target bundleno = 1 (0x1), region = 84 }

</bundles_post_ra>
